<compile_context>
chip_gen: v5e
topology: v5e:2x2
jax: 0.10.0
libtpu: 0.0.40
codegen_flags: <defaults>
</compile_context>

<pallas_src>
import numpy as np
import jax
import jax.numpy as jnp
from jax.experimental import pallas as pl
from jax.experimental.pallas import tpu as pltpu


OUT_W = 128  # lane-dense packed-output width


# ----------------------------- Pallas kernel -------------------------------
def vae_kernel(x_ref, ls_ref, cl_ref, cs_ref, eps_ref,
               wc1_ref, bc1_ref, wc2_ref, bc2_ref,
               wex_ref, wecdc_ref, bed_ref,
               wmulv_ref, bmulv_ref,
               wdz_ref, wout_ref, bout_ref,
               out_ref):
    f32 = jnp.float32
    L = ls_ref.shape[1]
    H = wex_ref.shape[1]
    R = eps_ref.shape[1]

    # ---- conditioning MLP; the [label_set, current_label, count_so_far]
    #      concat is folded in as three split-weight dots over one w_c1 ref ----
    c1 = (jnp.dot(ls_ref[...], wc1_ref[0:L, :], preferred_element_type=f32)
          + jnp.dot(cl_ref[...], wc1_ref[L:2 * L, :], preferred_element_type=f32)
          + jnp.dot(cs_ref[...], wc1_ref[2 * L:3 * L, :], preferred_element_type=f32)
          + bc1_ref[...])
    cond_h = jnp.maximum(c1, 0.0)
    condition = jnp.maximum(
        jnp.dot(cond_h, wc2_ref[...], preferred_element_type=f32) + bc2_ref[...],
        0.0)

    # ---- fused condition projection: lanes 0:H for encoder, H:2H for decoder.
    #      (decoder half does not depend on z, so it is off the critical path) --
    cond_proj = (jnp.dot(condition, wecdc_ref[...], preferred_element_type=f32)
                 + bed_ref[...])

    # ---- encoder: ReLU(Linear([x, condition])); x (B,1) is a rank-1 term ----
    enc_h = jnp.maximum(x_ref[...] * wex_ref[...] + cond_proj[:, 0:H], 0.0)

    # ---- fused mu | log_var head: one (H, 2R) matmul, split lanes ----
    mulv = jnp.dot(enc_h, wmulv_ref[...], preferred_element_type=f32) + bmulv_ref[...]
    mu = mulv[:, 0:R]
    log_var = mulv[:, R:2 * R]

    # ---- reparameterized sample + KL (single EUP exp; exp(log_var) = s*s) ----
    s = jnp.exp(0.5 * log_var)
    z = mu + eps_ref[...] * s
    kl = -0.5 * jnp.sum(1.0 + log_var - mu * mu - s * s, axis=1, keepdims=True)

    # ---- decoder: ReLU(z @ w_dz + condition-part) -> Linear(H -> 1) ----
    dec_h = jnp.maximum(
        jnp.dot(z, wdz_ref[...], preferred_element_type=f32) + cond_proj[:, H:2 * H],
        0.0)
    log_rate = (jnp.sum(dec_h * wout_ref[...], axis=1, keepdims=True)
                + bout_ref[0])  # b_out scalar from SMEM

    # ---- single lane-dense packed output: [z | kl | log_rate | 0-pad] ----
    pad = jnp.zeros((z.shape[0], out_ref.shape[1] - R - 2), dtype=f32)
    out_ref[...] = jnp.concatenate([z, kl, log_rate, pad], axis=1)


# ------------------------------ wrapper ------------------------------------
def _round_up(a, m):
    return (a + m - 1) // m * m


def fuse_params(p):
    """One-time fusion of the per-layer weights into the slabs the kernel uses."""
    return {
        "w_c1": p["w_c1"], "b_c1": p["b_c1"],
        "w_c2": p["w_c2"], "b_c2": p["b_c2"],
        "w_ex": p["w_ex"],
        "w_ecdc": jnp.concatenate([p["w_ec"], p["w_dc"]], axis=1),   # (C, 2H)
        "b_ed": jnp.concatenate([p["b_e"], p["b_d"]], axis=1),       # (1, 2H)
        "w_mulv": jnp.concatenate([p["w_mu"], p["w_lv"]], axis=1),   # (H, 2R)
        "b_mulv": jnp.concatenate([p["b_mu"], p["b_lv"]], axis=1),   # (1, 2R)
        "w_dz": p["w_dz"],
        "w_out": p["w_out"],
        "b_out": p["b_out"].reshape(1),                              # SMEM scalar
    }


def autoregressive_vae_forward(x, label_set, current_label, count_so_far,
                               eps, fp):
    B = x.shape[0]
    L = label_set.shape[1]
    C = fp["w_c2"].shape[0]
    H = fp["w_ex"].shape[1]
    R = fp["w_dz"].shape[0]
    assert R + 2 <= OUT_W

    # batch tile: multiple of 8 sublanes; cap so per-step VMEM stays small even
    # on v7x's 64 MiB / 32 MiB-scoped budget.
    TB = min(256, _round_up(B, 8))
    Bp = _round_up(B, TB)
    if Bp != B:
        padb = lambda a: jnp.pad(a, ((0, Bp - B), (0, 0)))
        x, label_set, current_label, count_so_far, eps = (
            padb(x), padb(label_set), padb(current_label),
            padb(count_so_far), padb(eps))

    bmap = lambda i: (i, 0)   # batch-tiled
    pin = lambda i: (0, 0)    # weights pinned across the grid

    in_specs = [
        pl.BlockSpec((TB, 1), bmap),          # x
        pl.BlockSpec((TB, L), bmap),          # label_set
        pl.BlockSpec((TB, L), bmap),          # current_label
        pl.BlockSpec((TB, L), bmap),          # count_so_far
        pl.BlockSpec((TB, R), bmap),          # eps
        pl.BlockSpec((3 * L, C), pin),        # w_c1 (3 stacked chunks)
        pl.BlockSpec((1, C), pin),            # b_c1
        pl.BlockSpec((C, C), pin),            # w_c2
        pl.BlockSpec((1, C), pin),            # b_c2
        pl.BlockSpec((1, H), pin),            # w_ex
        pl.BlockSpec((C, 2 * H), pin),        # w_ec | w_dc
        pl.BlockSpec((1, 2 * H), pin),        # b_e | b_d
        pl.BlockSpec((H, 2 * R), pin),        # w_mu | w_lv
        pl.BlockSpec((1, 2 * R), pin),        # b_mu | b_lv
        pl.BlockSpec((R, H), pin),            # w_dz
        pl.BlockSpec((1, H), pin),            # w_out
        pl.BlockSpec(memory_space=pltpu.MemorySpace.SMEM),  # b_out (1,)
    ]

    packed = pl.pallas_call(
        vae_kernel,
        grid=(Bp // TB,),
        in_specs=in_specs,
        out_specs=pl.BlockSpec((TB, OUT_W), bmap),
        out_shape=jax.ShapeDtypeStruct((Bp, OUT_W), jnp.float32),
        compiler_params=pltpu.CompilerParams(
            dimension_semantics=("parallel",)),
    )(x, label_set, current_label, count_so_far, eps,
      fp["w_c1"], fp["b_c1"], fp["w_c2"], fp["b_c2"],
      fp["w_ex"], fp["w_ecdc"], fp["b_ed"],
      fp["w_mulv"], fp["b_mulv"],
      fp["w_dz"], fp["w_out"], fp["b_out"])

    z = packed[:B, 0:R]
    kl = packed[:B, R]                   # (B,) like torch.sum(dim=1)
    log_rate = packed[:B, R + 1:R + 2]   # (B, 1)
    return log_rate, kl, z


# --------------------------- reference (pure JAX) ---------------------------
def reference_forward(x, label_set, current_label, count_so_far, eps, p):
    cond_in = jnp.concatenate([label_set, current_label, count_so_far], axis=1)
    cond_h = jax.nn.relu(cond_in @ p["w_c1"] + p["b_c1"])
    condition = jax.nn.relu(cond_h @ p["w_c2"] + p["b_c2"])
    enc_h = jax.nn.relu(x * p["w_ex"] + condition @ p["w_ec"] + p["b_e"])
    mu = enc_h @ p["w_mu"] + p["b_mu"]
    log_var = enc_h @ p["w_lv"] + p["b_lv"]
    z = mu + eps * jnp.exp(0.5 * log_var)
    kl = -0.5 * jnp.sum(1 + log_var - mu ** 2 - jnp.exp(log_var), axis=1)
    dec_h = jax.nn.relu(z @ p["w_dz"] + condition @ p["w_dc"] + p["b_d"])
    log_rate = jnp.sum(dec_h * p["w_out"], axis=1, keepdims=True) + p["b_out"]
    return log_rate, kl, z


# ------------------------------- main ---------------------------------------
if __name__ == "__main__":
    # small, module-consistent sizes
    B = 8                      # batch
    L = 16                     # number_labels
    C = 32                     # conditioning_size
    R = 32                     # representation_size
    H = 128                    # hidden width of the MLPs

    key = jax.random.PRNGKey(0)
    keys = jax.random.split(key, 24)
    ki = iter(keys)

    def init(shape, scale=0.05):
        return (scale * jax.random.normal(next(ki), shape)).astype(jnp.float32)

    # deterministic synthetic parameters (shapes implied by the module __init__)
    params = {
        "w_c1": init((3 * L, C)), "b_c1": init((1, C)),
        "w_c2": init((C, C)),     "b_c2": init((1, C)),
        "w_ex": init((1, H)),     "w_ec": init((C, H)), "b_e": init((1, H)),
        "w_mu": init((H, R)),     "b_mu": init((1, R)),
        "w_lv": init((H, R)),     "b_lv": init((1, R)),
        "w_dz": init((R, H)),     "w_dc": init((C, H)), "b_d": init((1, H)),
        "w_out": init((1, H)),    "b_out": init((1, 1)),
    }
    fused = fuse_params(params)

    # deterministic example inputs
    x = jax.random.poisson(next(ki), 3.0, (B, 1)).astype(jnp.float32)
    label_set = (jax.random.uniform(next(ki), (B, L)) > 0.5).astype(jnp.float32)
    current_label = jax.nn.one_hot(
        jax.random.randint(next(ki), (B,), 0, L), L).astype(jnp.float32)
    count_so_far = jax.random.poisson(next(ki), 2.0, (B, L)).astype(jnp.float32)
    # TODO(synk): torch.randn inside `sample` has no traceable-key equivalent;
    # the standard-normal noise is drawn here and fed to the kernel as `eps`.
    eps = jax.random.normal(next(ki), (B, R)).astype(jnp.float32)

    log_rate, kl, z = autoregressive_vae_forward(
        x, label_set, current_label, count_so_far, eps, fused)
    jax.block_until_ready((log_rate, kl, z))

    ref_log_rate, ref_kl, ref_z = reference_forward(
        x, label_set, current_label, count_so_far, eps, params)

    np.testing.assert_allclose(np.asarray(log_rate), np.asarray(ref_log_rate),
                               rtol=1e-5, atol=1e-5)
    np.testing.assert_allclose(np.asarray(kl), np.asarray(ref_kl),
                               rtol=1e-5, atol=1e-5)
    np.testing.assert_allclose(np.asarray(z), np.asarray(ref_z),
                               rtol=1e-5, atol=1e-5)

    assert log_rate.shape == (B, 1) and kl.shape == (B,) and z.shape == (B, R)
    print("KERNEL_OK")
</pallas_src>

<mosaic_0001>
module attributes {stable_mosaic.version = 11 : i64} {
  func.func @vae_kernel(%arg0: i32, %arg1: memref<8x1xf32, #tpu.memory_space<vmem>>, %arg2: memref<8x16xf32, #tpu.memory_space<vmem>>, %arg3: memref<8x16xf32, #tpu.memory_space<vmem>>, %arg4: memref<8x16xf32, #tpu.memory_space<vmem>>, %arg5: memref<8x32xf32, #tpu.memory_space<vmem>>, %arg6: memref<48x32xf32, #tpu.memory_space<vmem>>, %arg7: memref<1x32xf32, #tpu.memory_space<vmem>>, %arg8: memref<32x32xf32, #tpu.memory_space<vmem>>, %arg9: memref<1x32xf32, #tpu.memory_space<vmem>>, %arg10: memref<1x128xf32, #tpu.memory_space<vmem>>, %arg11: memref<32x256xf32, #tpu.memory_space<vmem>>, %arg12: memref<1x256xf32, #tpu.memory_space<vmem>>, %arg13: memref<128x64xf32, #tpu.memory_space<vmem>>, %arg14: memref<1x64xf32, #tpu.memory_space<vmem>>, %arg15: memref<32x128xf32, #tpu.memory_space<vmem>>, %arg16: memref<1x128xf32, #tpu.memory_space<vmem>>, %arg17: memref<1xf32, #tpu.memory_space<smem>>, %arg18: memref<8x128xf32, #tpu.memory_space<vmem>>) attributes {dimension_semantics = [#tpu.dimension_semantics<parallel>], iteration_bounds = array<i64: 1>, scalar_prefetch = 0 : i64, scratch_operands = 0 : i64, tpu.core_type = #tpu.core_type<tc>, window_params = [{transform_indices = @transform_0, window_bounds = array<i64: 8, 1>}, {transform_indices = @transform_1, window_bounds = array<i64: 8, 16>}, {transform_indices = @transform_2, window_bounds = array<i64: 8, 16>}, {transform_indices = @transform_3, window_bounds = array<i64: 8, 16>}, {transform_indices = @transform_4, window_bounds = array<i64: 8, 32>}, {pipeline_mode = #tpu.pipeline_mode<synchronous>, transform_indices = @transform_5, window_bounds = array<i64: 48, 32>}, {pipeline_mode = #tpu.pipeline_mode<synchronous>, transform_indices = @transform_6, window_bounds = array<i64: 1, 32>}, {pipeline_mode = #tpu.pipeline_mode<synchronous>, transform_indices = @transform_7, window_bounds = array<i64: 32, 32>}, {pipeline_mode = #tpu.pipeline_mode<synchronous>, transform_indices = @transform_8, window_bounds = array<i64: 1, 32>}, {pipeline_mode = #tpu.pipeline_mode<synchronous>, transform_indices = @transform_9, window_bounds = array<i64: 1, 128>}, {pipeline_mode = #tpu.pipeline_mode<synchronous>, transform_indices = @transform_10, window_bounds = array<i64: 32, 256>}, {pipeline_mode = #tpu.pipeline_mode<synchronous>, transform_indices = @transform_11, window_bounds = array<i64: 1, 256>}, {pipeline_mode = #tpu.pipeline_mode<synchronous>, transform_indices = @transform_12, window_bounds = array<i64: 128, 64>}, {pipeline_mode = #tpu.pipeline_mode<synchronous>, transform_indices = @transform_13, window_bounds = array<i64: 1, 64>}, {pipeline_mode = #tpu.pipeline_mode<synchronous>, transform_indices = @transform_14, window_bounds = array<i64: 32, 128>}, {pipeline_mode = #tpu.pipeline_mode<synchronous>, transform_indices = @transform_15, window_bounds = array<i64: 1, 128>}, {transform_indices = @transform_16, window_bounds = array<i64: 1>}, {transform_indices = @transform_17, window_bounds = array<i64: 8, 128>}]} {
    %c0 = arith.constant 0 : index
    %c0_0 = arith.constant 0 : index
    %0 = vector.load %arg2[%c0, %c0_0] : memref<8x16xf32, #tpu.memory_space<vmem>>, vector<8x16xf32>
    %c0_1 = arith.constant 0 : index
    %c0_2 = arith.constant 0 : index
    %1 = vector.load %arg6[%c0_1, %c0_2] : memref<48x32xf32, #tpu.memory_space<vmem>>, vector<16x32xf32>
    %cst = arith.constant dense<0.000000e+00> : vector<8x32xf32>
    %2 = tpu.matmul %0, %1, %cst {dimension_numbers = #tpu.dot_dimension_numbers<[1], [0], [0], [1], [0, 0, 1, 1], [], []>} : vector<8x16xf32>, vector<16x32xf32>, vector<8x32xf32> -> vector<8x32xf32>
    %c0_3 = arith.constant 0 : index
    %c0_4 = arith.constant 0 : index
    %3 = vector.load %arg3[%c0_3, %c0_4] : memref<8x16xf32, #tpu.memory_space<vmem>>, vector<8x16xf32>
    %c16 = arith.constant 16 : index
    %c0_5 = arith.constant 0 : index
    %4 = vector.load %arg6[%c16, %c0_5] : memref<48x32xf32, #tpu.memory_space<vmem>>, vector<16x32xf32>
    %cst_6 = arith.constant dense<0.000000e+00> : vector<8x32xf32>
    %5 = tpu.matmul %3, %4, %cst_6 {dimension_numbers = #tpu.dot_dimension_numbers<[1], [0], [0], [1], [0, 0, 1, 1], [], []>} : vector<8x16xf32>, vector<16x32xf32>, vector<8x32xf32> -> vector<8x32xf32>
    %6 = arith.addf %2, %5 : vector<8x32xf32>
    %c0_7 = arith.constant 0 : index
    %c0_8 = arith.constant 0 : index
    %7 = vector.load %arg4[%c0_7, %c0_8] : memref<8x16xf32, #tpu.memory_space<vmem>>, vector<8x16xf32>
    %c32 = arith.constant 32 : index
    %c0_9 = arith.constant 0 : index
    %8 = vector.load %arg6[%c32, %c0_9] : memref<48x32xf32, #tpu.memory_space<vmem>>, vector<16x32xf32>
    %cst_10 = arith.constant dense<0.000000e+00> : vector<8x32xf32>
    %9 = tpu.matmul %7, %8, %cst_10 {dimension_numbers = #tpu.dot_dimension_numbers<[1], [0], [0], [1], [0, 0, 1, 1], [], []>} : vector<8x16xf32>, vector<16x32xf32>, vector<8x32xf32> -> vector<8x32xf32>
    %10 = arith.addf %6, %9 : vector<8x32xf32>
    %c0_11 = arith.constant 0 : index
    %c0_12 = arith.constant 0 : index
    %11 = vector.load %arg7[%c0_11, %c0_12] : memref<1x32xf32, #tpu.memory_space<vmem>>, vector<1x32xf32>
    %12 = vector.broadcast %11 : vector<1x32xf32> to vector<8x32xf32>
    %13 = arith.addf %10, %12 : vector<8x32xf32>
    %cst_13 = arith.constant 0.000000e+00 : f32
    %14 = vector.broadcast %cst_13 : f32 to vector<8x32xf32>
    %15 = arith.maximumf %13, %14 : vector<8x32xf32>
    %c0_14 = arith.constant 0 : index
    %c0_15 = arith.constant 0 : index
    %16 = vector.load %arg8[%c0_14, %c0_15] : memref<32x32xf32, #tpu.memory_space<vmem>>, vector<32x32xf32>
    %cst_16 = arith.constant dense<0.000000e+00> : vector<8x32xf32>
    %17 = tpu.matmul %15, %16, %cst_16 {dimension_numbers = #tpu.dot_dimension_numbers<[1], [0], [0], [1], [0, 0, 1, 1], [], []>} : vector<8x32xf32>, vector<32x32xf32>, vector<8x32xf32> -> vector<8x32xf32>
    %c0_17 = arith.constant 0 : index
    %c0_18 = arith.constant 0 : index
    %18 = vector.load %arg9[%c0_17, %c0_18] : memref<1x32xf32, #tpu.memory_space<vmem>>, vector<1x32xf32>
    %19 = vector.broadcast %18 : vector<1x32xf32> to vector<8x32xf32>
    %20 = arith.addf %17, %19 : vector<8x32xf32>
    %cst_19 = arith.constant 0.000000e+00 : f32
    %21 = vector.broadcast %cst_19 : f32 to vector<8x32xf32>
    %22 = arith.maximumf %20, %21 : vector<8x32xf32>
    %c0_20 = arith.constant 0 : index
    %c0_21 = arith.constant 0 : index
    %23 = vector.load %arg11[%c0_20, %c0_21] : memref<32x256xf32, #tpu.memory_space<vmem>>, vector<32x256xf32>
    %cst_22 = arith.constant dense<0.000000e+00> : vector<8x256xf32>
    %24 = tpu.matmul %22, %23, %cst_22 {dimension_numbers = #tpu.dot_dimension_numbers<[1], [0], [0], [1], [0, 0, 1, 1], [], []>} : vector<8x32xf32>, vector<32x256xf32>, vector<8x256xf32> -> vector<8x256xf32>
    %c0_23 = arith.constant 0 : index
    %c0_24 = arith.constant 0 : index
    %25 = vector.load %arg12[%c0_23, %c0_24] : memref<1x256xf32, #tpu.memory_space<vmem>>, vector<1x256xf32>
    %26 = vector.broadcast %25 : vector<1x256xf32> to vector<8x256xf32>
    %27 = arith.addf %24, %26 : vector<8x256xf32>
    %c0_25 = arith.constant 0 : index
    %c0_26 = arith.constant 0 : index
    %28 = vector.load %arg1[%c0_25, %c0_26] : memref<8x1xf32, #tpu.memory_space<vmem>>, vector<8x1xf32>
    %c0_27 = arith.constant 0 : index
    %c0_28 = arith.constant 0 : index
    %29 = vector.load %arg10[%c0_27, %c0_28] : memref<1x128xf32, #tpu.memory_space<vmem>>, vector<1x128xf32>
    %30 = vector.broadcast %28 : vector<8x1xf32> to vector<8x128xf32>
    %31 = vector.broadcast %29 : vector<1x128xf32> to vector<8x128xf32>
    %32 = arith.mulf %30, %31 : vector<8x128xf32>
    %33 = vector.extract_strided_slice %27 {offsets = [0, 0], sizes = [8, 128], strides = [1, 1]} : vector<8x256xf32> to vector<8x128xf32>
    %34 = arith.addf %32, %33 : vector<8x128xf32>
    %cst_29 = arith.constant 0.000000e+00 : f32
    %35 = vector.broadcast %cst_29 : f32 to vector<8x128xf32>
    %36 = arith.maximumf %34, %35 : vector<8x128xf32>
    %c0_30 = arith.constant 0 : index
    %c0_31 = arith.constant 0 : index
    %37 = vector.load %arg13[%c0_30, %c0_31] : memref<128x64xf32, #tpu.memory_space<vmem>>, vector<128x64xf32>
    %cst_32 = arith.constant dense<0.000000e+00> : vector<8x64xf32>
    %38 = tpu.matmul %36, %37, %cst_32 {dimension_numbers = #tpu.dot_dimension_numbers<[1], [0], [0], [1], [0, 0, 1, 1], [], []>} : vector<8x128xf32>, vector<128x64xf32>, vector<8x64xf32> -> vector<8x64xf32>
    %c0_33 = arith.constant 0 : index
    %c0_34 = arith.constant 0 : index
    %39 = vector.load %arg14[%c0_33, %c0_34] : memref<1x64xf32, #tpu.memory_space<vmem>>, vector<1x64xf32>
    %40 = vector.broadcast %39 : vector<1x64xf32> to vector<8x64xf32>
    %41 = arith.addf %38, %40 : vector<8x64xf32>
    %42 = vector.extract_strided_slice %41 {offsets = [0, 0], sizes = [8, 32], strides = [1, 1]} : vector<8x64xf32> to vector<8x32xf32>
    %43 = vector.extract_strided_slice %41 {offsets = [0, 32], sizes = [8, 32], strides = [1, 1]} : vector<8x64xf32> to vector<8x32xf32>
    %cst_35 = arith.constant 5.000000e-01 : f32
    %44 = vector.broadcast %cst_35 : f32 to vector<8x32xf32>
    %45 = arith.mulf %44, %43 : vector<8x32xf32>
    %46 = math.exp %45 : vector<8x32xf32>
    %c0_36 = arith.constant 0 : index
    %c0_37 = arith.constant 0 : index
    %47 = vector.load %arg5[%c0_36, %c0_37] : memref<8x32xf32, #tpu.memory_space<vmem>>, vector<8x32xf32>
    %48 = arith.mulf %47, %46 : vector<8x32xf32>
    %49 = arith.addf %42, %48 : vector<8x32xf32>
    %cst_38 = arith.constant 1.000000e+00 : f32
    %50 = vector.broadcast %cst_38 : f32 to vector<8x32xf32>
    %51 = arith.addf %50, %43 : vector<8x32xf32>
    %52 = arith.mulf %42, %42 : vector<8x32xf32>
    %53 = arith.subf %51, %52 : vector<8x32xf32>
    %54 = arith.mulf %46, %46 : vector<8x32xf32>
    %55 = arith.subf %53, %54 : vector<8x32xf32>
    %cst_39 = arith.constant dense<0.000000e+00> : vector<8xf32>
    %56 = vector.multi_reduction <add>, %55, %cst_39 [1] : vector<8x32xf32> to vector<8xf32>
    %57 = vector.shape_cast %56 : vector<8xf32> to vector<8x1xf32>
    %cst_40 = arith.constant -5.000000e-01 : f32
    %58 = vector.broadcast %cst_40 : f32 to vector<8x1xf32>
    %59 = arith.mulf %58, %57 : vector<8x1xf32>
    %c0_41 = arith.constant 0 : index
    %c0_42 = arith.constant 0 : index
    %60 = vector.load %arg15[%c0_41, %c0_42] : memref<32x128xf32, #tpu.memory_space<vmem>>, vector<32x128xf32>
    %cst_43 = arith.constant dense<0.000000e+00> : vector<8x128xf32>
    %61 = tpu.matmul %49, %60, %cst_43 {dimension_numbers = #tpu.dot_dimension_numbers<[1], [0], [0], [1], [0, 0, 1, 1], [], []>} : vector<8x32xf32>, vector<32x128xf32>, vector<8x128xf32> -> vector<8x128xf32>
    %62 = vector.extract_strided_slice %27 {offsets = [0, 128], sizes = [8, 128], strides = [1, 1]} : vector<8x256xf32> to vector<8x128xf32>
    %63 = arith.addf %61, %62 : vector<8x128xf32>
    %cst_44 = arith.constant 0.000000e+00 : f32
    %64 = vector.broadcast %cst_44 : f32 to vector<8x128xf32>
    %65 = arith.maximumf %63, %64 : vector<8x128xf32>
    %c0_45 = arith.constant 0 : index
    %c0_46 = arith.constant 0 : index
    %66 = vector.load %arg16[%c0_45, %c0_46] : memref<1x128xf32, #tpu.memory_space<vmem>>, vector<1x128xf32>
    %67 = vector.broadcast %66 : vector<1x128xf32> to vector<8x128xf32>
    %68 = arith.mulf %65, %67 : vector<8x128xf32>
    %cst_47 = arith.constant dense<0.000000e+00> : vector<8xf32>
    %69 = vector.multi_reduction <add>, %68, %cst_47 [1] : vector<8x128xf32> to vector<8xf32>
    %70 = vector.shape_cast %69 : vector<8xf32> to vector<8x1xf32>
    %c0_48 = arith.constant 0 : index
    %71 = memref.load %arg17[%c0_48] : memref<1xf32, #tpu.memory_space<smem>>
    %72 = vector.broadcast %71 : f32 to vector<8x1xf32>
    %73 = arith.addf %70, %72 : vector<8x1xf32>
    %cst_49 = arith.constant 0.000000e+00 : f32
    %74 = vector.broadcast %cst_49 : f32 to vector<8x94xf32>
    %75 = tpu.concatenate %49, %59, %73, %74 in 1 : vector<8x32xf32>, vector<8x1xf32>, vector<8x1xf32>, vector<8x94xf32> -> vector<8x128xf32>
    %c0_50 = arith.constant 0 : index
    %c0_51 = arith.constant 0 : index
    %76 = vector.load %arg18[%c0_50, %c0_51] : memref<8x128xf32, #tpu.memory_space<vmem>>, vector<8x128xf32>
    tpu.vector_store %arg18[%c0_50, %c0_51], %75 {strides = array<i32>} : memref<8x128xf32, #tpu.memory_space<vmem>>, vector<8x128xf32>,
    return
  }
  func.func @transform_0(%arg0: i32) -> (i32, i32) {
    %c0_i32 = arith.constant 0 : i32
    %c0_i32_0 = arith.constant 0 : i32
    return %arg0, %c0_i32 : i32, i32
  }
  func.func @transform_1(%arg0: i32) -> (i32, i32) {
    %c0_i32 = arith.constant 0 : i32
    %c0_i32_0 = arith.constant 0 : i32
    return %arg0, %c0_i32 : i32, i32
  }
  func.func @transform_2(%arg0: i32) -> (i32, i32) {
    %c0_i32 = arith.constant 0 : i32
    %c0_i32_0 = arith.constant 0 : i32
    return %arg0, %c0_i32 : i32, i32
  }
  func.func @transform_3(%arg0: i32) -> (i32, i32) {
    %c0_i32 = arith.constant 0 : i32
    %c0_i32_0 = arith.constant 0 : i32
    return %arg0, %c0_i32 : i32, i32
  }
  func.func @transform_4(%arg0: i32) -> (i32, i32) {
    %c0_i32 = arith.constant 0 : i32
    %c0_i32_0 = arith.constant 0 : i32
    return %arg0, %c0_i32 : i32, i32
  }
  func.func @transform_5(%arg0: i32) -> (i32, i32) {
    %c0_i32 = arith.constant 0 : i32
    %c0_i32_0 = arith.constant 0 : i32
    %c0_i32_1 = arith.constant 0 : i32
    return %c0_i32, %c0_i32_0 : i32, i32
  }
  func.func @transform_6(%arg0: i32) -> (i32, i32) {
    %c0_i32 = arith.constant 0 : i32
    %c0_i32_0 = arith.constant 0 : i32
    %c0_i32_1 = arith.constant 0 : i32
    return %c0_i32, %c0_i32_0 : i32, i32
  }
  func.func @transform_7(%arg0: i32) -> (i32, i32) {
    %c0_i32 = arith.constant 0 : i32
    %c0_i32_0 = arith.constant 0 : i32
    %c0_i32_1 = arith.constant 0 : i32
    return %c0_i32, %c0_i32_0 : i32, i32
  }
  func.func @transform_8(%arg0: i32) -> (i32, i32) {
    %c0_i32 = arith.constant 0 : i32
    %c0_i32_0 = arith.constant 0 : i32
    %c0_i32_1 = arith.constant 0 : i32
    return %c0_i32, %c0_i32_0 : i32, i32
  }
  func.func @transform_9(%arg0: i32) -> (i32, i32) {
    %c0_i32 = arith.constant 0 : i32
    %c0_i32_0 = arith.constant 0 : i32
    %c0_i32_1 = arith.constant 0 : i32
    return %c0_i32, %c0_i32_0 : i32, i32
  }
  func.func @transform_10(%arg0: i32) -> (i32, i32) {
    %c0_i32 = arith.constant 0 : i32
    %c0_i32_0 = arith.constant 0 : i32
    %c0_i32_1 = arith.constant 0 : i32
    return %c0_i32, %c0_i32_0 : i32, i32
  }
  func.func @transform_11(%arg0: i32) -> (i32, i32) {
    %c0_i32 = arith.constant 0 : i32
    %c0_i32_0 = arith.constant 0 : i32
    %c0_i32_1 = arith.constant 0 : i32
    return %c0_i32, %c0_i32_0 : i32, i32
  }
  func.func @transform_12(%arg0: i32) -> (i32, i32) {
    %c0_i32 = arith.constant 0 : i32
    %c0_i32_0 = arith.constant 0 : i32
    %c0_i32_1 = arith.constant 0 : i32
    return %c0_i32, %c0_i32_0 : i32, i32
  }
  func.func @transform_13(%arg0: i32) -> (i32, i32) {
    %c0_i32 = arith.constant 0 : i32
    %c0_i32_0 = arith.constant 0 : i32
    %c0_i32_1 = arith.constant 0 : i32
    return %c0_i32, %c0_i32_0 : i32, i32
  }
  func.func @transform_14(%arg0: i32) -> (i32, i32) {
    %c0_i32 = arith.constant 0 : i32
    %c0_i32_0 = arith.constant 0 : i32
    %c0_i32_1 = arith.constant 0 : i32
    return %c0_i32, %c0_i32_0 : i32, i32
  }
  func.func @transform_15(%arg0: i32) -> (i32, i32) {
    %c0_i32 = arith.constant 0 : i32
    %c0_i32_0 = arith.constant 0 : i32
    %c0_i32_1 = arith.constant 0 : i32
    return %c0_i32, %c0_i32_0 : i32, i32
  }
  func.func @transform_16(%arg0: i32) -> i32 {
    %c0_i32 = arith.constant 0 : i32
    %c0_i32_0 = arith.constant 0 : i32
    return %c0_i32 : i32
  }
  func.func @transform_17(%arg0: i32) -> (i32, i32) {
    %c0_i32 = arith.constant 0 : i32
    %c0_i32_0 = arith.constant 0 : i32
    return %arg0, %c0_i32 : i32, i32
  }
}

</mosaic_0001>

<bundles_post_ra>
// kernel: tpu_custom_call.1
= control target key start
LH: loop header
LB: loop body
LE: loop exit
PB: predicated region body
PF: predicated region fallthrough
CT: control target
= control target key end

     0   :  { %s672_s0 = inlined_call_operand.vmem [shape: f32[8,1], index: 0, kind: input, shape index: {}]   ;;  %s673_s1 = inlined_call_operand.vmem [shape: f32[8,16], index: 1, kind: input, shape index: {}]   ;;  %s674_s2 = inlined_call_operand.vmem [shape: f32[8,16], index: 2, kind: input, shape index: {}]   ;;  %s675_s3 = inlined_call_operand.vmem [shape: f32[8,16], index: 3, kind: input, shape index: {}]   ;;  %s676_s4 = inlined_call_operand.vmem [shape: f32[8,32], index: 4, kind: input, shape index: {}]   ;;  %s677_s5 = inlined_call_operand.vmem [shape: f32[48,32], index: 5, kind: input, shape index: {}]   ;;  %s678_s6 = inlined_call_operand.vmem [shape: f32[1,32], index: 6, kind: input, shape index: {}]   ;;  %s679_s7 = inlined_call_operand.vmem [shape: f32[32,32], index: 7, kind: input, shape index: {}]   ;;  %s680_s8 = inlined_call_operand.vmem [shape: f32[1,32], index: 8, kind: input, shape index: {}]   ;;  %s681_s9 = inlined_call_operand.vmem [shape: f32[1,128], index: 9, kind: input, shape index: {}]   ;;  %s682_s10 = inlined_call_operand.vmem [shape: f32[32,256], index: 10, kind: input, shape index: {}]   ;;  %s683_s11 = inlined_call_operand.vmem [shape: f32[1,256], index: 11, kind: input, shape index: {}]   ;;  %s684_s12 = inlined_call_operand.vmem [shape: f32[128,64], index: 12, kind: input, shape index: {}]   ;;  %s685_s13 = inlined_call_operand.vmem [shape: f32[1,64], index: 13, kind: input, shape index: {}]   ;;  %s686_s14 = inlined_call_operand.vmem [shape: f32[32,128], index: 14, kind: input, shape index: {}]   ;;  %s687_s15 = inlined_call_operand.vmem [shape: f32[1,128], index: 15, kind: input, shape index: {}]   ;;  %s688_s16 = inlined_call_operand.<no memory space> [shape: f32[1], index: 16, kind: input, shape index: {}]   ;;  %s689_s17 = inlined_call_operand.hbm [shape: f32[8,128], index: 17, kind: output, shape index: {}]  }
   0x1   :  { %690 = sst [smem:[#allocation6_spill]] %s672_s0 }
   0x2   :  { %691 = sst [smem:[#allocation7_spill]] %s673_s1 }
   0x3   :  { %v63_v0 = vld [vmem:[%s677_s5 + $0x18] sm:$0xff]  ;;  %v60_v1 = vld [vmem:[%s677_s5 + $0x8] sm:$0xff]  ;;  %v62_v2 = vld [vmem:[%s677_s5 + $0x10] sm:$0xff]  ;;  %vm64_vm0 = vcmask 130048   ;;  %s692_s21 = sld [smem:[#allocation7_spill]] }
   0x4   :  { %82 = vmatpush.msra.mxu0 %v63_v0  ;;  %105 = vmatpush.msra.mxu1 %v60_v1  ;;  %v59_v3 = vld [vmem:[%s677_s5] sm:$0xff]  ;;  %v113_v6 = vld [vmem:[%s677_s5 + $0x28] sm:$0xff] }
   0x5   :  { %v61_v4 = vld [vmem:[%s674_s2] sm:$0xff] }
   0x6   :  { %v112_v7 = vld [vmem:[%s677_s5 + $0x20] sm:$0xff]  ;;  %83 = vmatpush.msra.mxu0 %v62_v2  ;;  %106 = vmatpush.msra.mxu1 %v59_v3 }
   0x7   :  { %374 = vmatmul.msk.f32.vlgmr.msra.gmra.mxu0 %vm64_vm0, %v61_v4 }
   0x9   :  { %v58_v5 = vld [vmem:[%s692_s21] sm:$0xff] }
   0xa   :  { %375 = vmatmul.msk.f32.vlgmr.msra.gmra.mxu1 %vm64_vm0, %v58_v5 }
   0xb   :  { %23 = vsyncpa [#allocation4], 0  ;;  %131 = vmatpush.msrb.mxu0 %v113_v6  ;;  %v111_v8 = vld [vmem:[%s675_s3] sm:$0xff]  ;;  %v147_v9 = vld [vmem:[%s679_s7 + $0x18] sm:$0xff]  ;;  %vm152_vm1 = vcmask 261120   ;;  %s693_s3 = sld [smem:[#allocation6_spill]] }
   0xc   :  { %168 = vmatpush.msra.mxu3 %v147_v9  ;;  %v146_v10 = vld [vmem:[%s679_s7 + $0x10] sm:$0xff]  ;;  %v145_v11 = vld [vmem:[%s679_s7 + $0x8] sm:$0xff]  ;;  %v144_v12 = vld [vmem:[%s679_s7] sm:$0xff]  ;;  %v419_v32 = vmov 0   ;;  %vm353_vm2 = vcmask 269312   ;;  %s422_s24 = smov [#allocation3]  }
   0xd   :  { %132 = vmatpush.msrb.mxu0 %v112_v7  ;;  %v183_v13 = vld [vmem:[%s682_s10 + $0x30] sm:$0xff]  ;;  %v184_v14 = vld [vmem:[%s682_s10 + $0x38] sm:$0xff]  ;;  %v181_v15 = vld [vmem:[%s682_s10 + $0x20] sm:$0xff]  ;;  %385 = vset.pattern.permute.xlu0 %v419_v32  ;;  %s363_s25 = sshll.u32 %s422_s24, 4  ;;  %s365_s27 = sshll.u32 %s689_s17, 4  ;;  %vm355_vm3 = vcmask 277504   ;;  %s364_s25 = int_to_ptr.vmem [resolvable:$true] %s363_s25  ;;  %s366_s27 = int_to_ptr.hbm [resolvable:$true] %s365_s27 }
   0xe   :  { %169 = vmatpush.msra.mxu3 %v146_v10  ;;  %226 = vmatpush.msrb.mxu1 %v184_v14  ;;  %v386_v19 = vld [vmem:[%s678_s6] ss:$0 sm:$0xff]  ;;  %v182_v24 = vld [vmem:[%s682_s10 + $0x28] sm:$0xff]  ;;  %v179_v25 = vld [vmem:[%s682_s10 + $0x10] sm:$0xff] }
   0xf   :  { %376 = vmatmul.msk.f32.vlgmr.msrb.gmra.mxu0 %vm64_vm0, %v111_v8  ;;  %v180_v26 = vld [vmem:[%s682_s10 + $0x18] sm:$0xff]  ;;  %v177_v27 = vld [vmem:[%s682_s10] sm:$0xff]  ;;  %v178_v28 = vld [vmem:[%s682_s10 + $0x8] sm:$0xff] }
  0x10   :  { %170 = vmatpush.msra.mxu3 %v145_v11  ;;  %206 = vmatpush.msra.mxu0 %v183_v13  ;;  %v262_v30 = vld [vmem:[%s684_s12 + $0x78] sm:$0xff]  ;;  %v261_v31 = vld [vmem:[%s684_s12 + $0x70] sm:$0xff]  ;;  %v260_v33 = vld [vmem:[%s684_s12 + $0x68] sm:$0xff] }
  0x11   :  { %227 = vmatpush.msrb.mxu1 %v182_v24  ;;  %v234_v29 = vld [vmem:[%s693_s3] sm:$0xff]  ;;  %267 = vmatpush.msra.mxu2 %v262_v30  ;;  %v258_v35 = vld [vmem:[%s684_s12 + $0x58] sm:$0xff]  ;;  %v257_v36 = vld [vmem:[%s684_s12 + $0x50] sm:$0xff] }
  0x12   :  { %171 = vmatpush.msra.mxu3 %v144_v12  ;;  %207 = vmatpush.msra.mxu0 %v181_v15  ;;  %v259_v34 = vld [vmem:[%s684_s12 + $0x60] sm:$0xff]  ;;  %v256_v37 = vld [vmem:[%s684_s12 + $0x48] sm:$0xff]  ;;  %v254_v39 = vld [vmem:[%s684_s12 + $0x38] sm:$0xff] }
  0x13   :  { %228 = vmatpush.msrb.mxu1 %v180_v26  ;;  %238 = vperm.xlu0 %385, %v234_v29   ;;  %v255_v38 = vld [vmem:[%s684_s12 + $0x40] sm:$0xff]  ;;  %v253_v40 = vld [vmem:[%s684_s12 + $0x30] sm:$0xff]  ;;  %v252_v41 = vld [vmem:[%s684_s12 + $0x28] sm:$0xff] }
  0x14   :  { %208 = vmatpush.msra.mxu0 %v179_v25  ;;  %268 = vmatpush.msra.mxu2 %v261_v31  ;;  %v251_v42 = vld [vmem:[%s684_s12 + $0x20] sm:$0xff]  ;;  %v250_v43 = vld [vmem:[%s684_s12 + $0x18] sm:$0xff]  ;;  %v249_v48 = vld [vmem:[%s684_s12 + $0x10] sm:$0xff] }
  0x15   :  { %229 = vmatpush.msrb.mxu1 %v178_v28  ;;  %v387_v44 = vld [vmem:[%s680_s8] ss:$0 sm:$0xff]  ;;  %v248_v49 = vld [vmem:[%s684_s12 + $0x8] sm:$0xff]  ;;  %v317_v3 = vld [vmem:[%s686_s14 + $0x18] sm:$0xff]  ;;  %v350_v28 = vstv %s688_s16 }
  0x16   :  { %209 = vmatpush.msra.mxu0 %v177_v27  ;;  %269 = vmatpush.msra.mxu2 %v260_v33  ;;  %v247_v50 = vld [vmem:[%s684_s12] sm:$0xff]  ;;  %v316_v4 = vld [vmem:[%s686_s14 + $0x10] sm:$0xff]  ;;  %v315_v5 = vld [vmem:[%s686_s14 + $0x8] sm:$0xff] }
  0x17   :  { %v185_v51 = vld [vmem:[%s683_s11] sm:$0x3]  ;;  %s420_s11 = smov 32   ;;  %333 = vmatpush.msrb.mxu3 %v317_v3 }
  0x18   :  { %270 = vmatpush.msra.mxu2 %v259_v34  ;;  %v388_v52 = vld [vmem:[%s681_s9] ss:$0 sm:$0xff]  ;;  %v187_v54 = vperm.slane %v185_v51, 0  ;;  %s421_s9 = smov 96  }
  0x19   :  { %v389_v60 = vld [vmem:[%s685_s13] ss:$0 sm:$0xff]  ;;  %334 = vmatpush.msrb.mxu3 %v316_v4 }
  0x1a   :  { %271 = vmatpush.msra.mxu2 %v258_v35  ;;  %v314_v6 = vld [vmem:[%s686_s14] sm:$0xff] }
  0x1b   :  { %335 = vmatpush.msrb.mxu3 %v315_v5  ;;  %v290_v12 = vld [vmem:[%s676_s4] sm:$0xff] }
  0x1c   :  { %272 = vmatpush.msra.mxu2 %v257_v36 }
  0x1d   :  { %336 = vmatpush.msrb.mxu3 %v314_v6 }
  0x1e   :  { %273 = vmatpush.msra.mxu2 %v256_v37 }
  0x20   :  { %274 = vmatpush.msra.mxu2 %v255_v38 }
  0x22   :  { %275 = vmatpush.msra.mxu2 %v254_v39 }
  0x24   :  { %276 = vmatpush.msra.mxu2 %v253_v40 }
  0x26   :  { %277 = vmatpush.msra.mxu2 %v252_v41 }
  0x28   :  { %278 = vmatpush.msra.mxu2 %v251_v42 }
  0x2a   :  { %279 = vmatpush.msra.mxu2 %v250_v43 }
  0x2c   :  { %280 = vmatpush.msra.mxu2 %v249_v48 }
  0x2e   :  { %281 = vmatpush.msra.mxu2 %v248_v49 }
  0x30   :  { %282 = vmatpush.msra.mxu2 %v247_v50 }
  0x84   :  { %v85_v16 = vpop.f32.mrf.mxu0 }
  0x85   :  { %v239_v53 = vpop.permute.xlu0 %238 }
  0x86   :  { %v244_v55 = vmul.f32 %v388_v52, %v239_v53 }
  0x87   :  { %v108_v17 = vpop.f32.mrf.mxu1 }
  0x88   :  { %v109_v18 = vadd.f32 %v108_v17, %v85_v16 }
  0x8c   :  { %v134_v20 = vpop.f32.mrf.mxu0 }
  0x8d   :  { %v137_v21 = vadd.f32 %v134_v20, %v109_v18  ;;  %v188_v18 = vperm.slane %v185_v51, 1 }
  0x8f   :  { %v142_v22 = vadd.f32 %v386_v19, %v137_v21 }
  0x91   :  { %v143_v23 = vmax.f32 %v142_v22, 0.0 }
  0x93   :  { %377 = vmatmul.msk.f32.vlgmr.msra.gmra.mxu3 %vm152_vm1, %v143_v23  ;;  %v390_v23 = vld [vmem:[%s687_s15] ss:$0 sm:$0xff] }
 0x116   :  { %v173_v45 = vpop.f32.mrf.mxu3 }
 0x117   :  { %v174_v46 = vadd.f32 %v387_v44, %v173_v45 }
 0x119   :  { %v176_v47 = vmax.f32 %v174_v46, 0.0 }
 0x11b   :  { %378 = vmatmul.msk.f32.vlgmr.msra.gmra.mxu0 %vm152_vm1, %v176_v47  ;;  %379 = vmatmul.msk.f32.vlgmr.msrb.gmra.mxu1 %vm152_vm1, %v176_v47 }
 0x198   :  { %v211_v56 = vpop.f32.mrf.mxu0  ;;  %v231_v19 = vpop.f32.mrf.mxu1 }
 0x199   :  { %v212_v57 = vadd.f32 %v211_v56, %v187_v54  ;;  %v232_v20 = vadd.f32 %v231_v19, %v188_v18 }
 0x19b   :  { %v245_v58 = vadd.f32 %v244_v55, %v212_v57 }
 0x19d   :  { %v246_v59 = vmax.f32 %v245_v58, 0.0 }
 0x19f   :  { %283 = vmatmul.f32.vlgmr.msra.gmra.mxu2 %v246_v59 }
 0x222   :  { %v284_v61 = vpop.f32.mrf.mxu2 }
 0x223   :  { %v285_v62 = vadd.f32 %v389_v60, %v284_v61 }
 0x225   :  { %v287_v63 = vmul.f32 0.5, %v285_v62  ;;  %v298_v0 = vmul.f32 %v285_v62, %v285_v62  ;;  %v297_v7 = vadd.f32 1.0, %v285_v62 }
 0x227   :  { %v288_v1 = vmul.f32 1.442695, %v287_v63  ;;  %300 = vrot.lane.b32.xlu1 %v298_v0, %s420_s11 }
 0x229   :  { %391 = vpow2.f32 %v288_v1 }
 0x22f   :  { %v392_v2 = vpop.eup %391 }
 0x230   :  { %292 = vrot.lane.b32.xlu0 %v392_v2, %s421_s9  ;;  %v304_v10 = vmul.f32 %v392_v2, %v392_v2 }
 0x299   :  { %v301_v8 = vpop.permute.xlu1 %300 }
 0x29a   :  { %v303_v9 = vsub.f32 %v297_v7, %v301_v8 }
 0x29c   :  { %v305_v11 = vsub.f32 %v303_v9, %v304_v10 }
 0x29e   :  { %307 = vrot.lane.b32.xlu1 %v305_v11, %s421_s9 }
 0x2a2   :  { %v293_v13 = vpop.permute.xlu0 %292 }
 0x2a3   :  { %v295_v14 = vmul.f32 %v293_v13, %v290_v12 }
 0x2a5   :  { %v296_v15 = vadd.f32 %v295_v14, %v285_v62 }
 0x2a7   :  { %380 = vmatmul.msk.f32.vlgmr.msrb.gmra.mxu3 %vm152_vm1, %v296_v15 }
 0x310   :  { %v308_v16 = vpop.permute.xlu1 %307 }
 0x311   :  { %v310_v17 = vsel %vm152_vm1, %v308_v16, 0.0 }
 0x312   :  { %311 = vadd.xlane.f32.xlu2 %v310_v17 }
 0x32a   :  { %v338_v21 = vpop.f32.mrf.mxu3 }
 0x32b   :  { %v339_v22 = vadd.f32 %v338_v21, %v232_v20 }
 0x32d   :  { %v341_v24 = vmax.f32 %v339_v22, 0.0 }
 0x32f   :  { %v346_v25 = vmul.f32 %v390_v23, %v341_v24 }
 0x331   :  { %347 = vadd.xlane.f32.xlu2 %v346_v25 }
 0x385   :  { %v312_v26 = vpop.xlane.xlu2 %311 }
 0x386   :  { %v313_v27 = vmul.f32 -0.5, %v312_v26 }
 0x388   :  { %v352_v31 = vsel %vm152_vm1, %v296_v15, %v313_v27 }
 0x3a4   :  { %v348_v29 = vpop.xlane.xlu2 %347 }
 0x3a5   :  { %v351_v30 = vadd.f32 %v350_v28, %v348_v29 }
 0x3a7   :  { %v354_v32 = vsel %vm353_vm2, %v352_v31, %v351_v30 }
 0x3a8   :  { %v356_v33 = vsel %vm355_vm3, %v354_v32, 0.0 }
 0x3a9   :  { %357 = vst [vmem:[#allocation3] sm:$0xff] %v356_v33 }
 0x3aa   :  { %368 = dma.vmem_to_hbm [thread:$0]  %s364_s25, 128, %s366_s27, [#allocation4]  }
 0x3ab   :  { %417 = dma.done.wait [#allocation4], 128  }
 0x3ac   :  { %418 = vsyncadd [#allocation4], 4294967168 }
 0x3ad   :  { %373 = vsyncpa [#allocation4], 1 }

</bundles_post_ra>
